<compile_context>
chip_gen: v7x
topology: tpu7x:2x2x1
jax: 0.10.0
libtpu: 0.0.40
codegen_flags: <defaults>
</compile_context>

<pallas_src>
import jax
import jax.numpy as jnp
from jax.experimental import pallas as pl
from jax.experimental.pallas import tpu as pltpu


def _round_up(x, n):
    return ((x + n - 1) // n) * n


def _cdiv(a, b):
    return -(-a // b)


def _tensorcores_per_chip():
    # v7x has 2 TensorCores per chip; v5e/v6e have 1. Best-effort detection.
    try:
        kind = jax.devices()[0].device_kind.lower()
        if "v7" in kind or "tpu7" in kind:
            return 2
    except Exception:
        pass
    return 1


def _choose_tiling(m, n_cores, max_tile=2048):
    """Pick (tile_m, m_pad) per the perf review.

    Single-TC chips (v5e/v6e): minimize grid steps (grid is a sequential loop;
    ~0.35 us/step overhead) -> one step for small M, <=2048-row tiles for
    large M. v7x: even number of balanced row tiles so the "parallel" axis
    keeps both TensorCores busy.
    """
    m8 = _round_up(m, 8)
    n_tiles = _cdiv(m8, max_tile)
    if n_cores > 1 and m8 > 8:
        n_tiles = max(2, _round_up(n_tiles, 2))
    tile_m = _round_up(_cdiv(m8, n_tiles), 8)
    m_pad = n_tiles * tile_m
    return tile_m, m_pad


def conv_relu_kernel(x_ref, w_ref, o_ref):
    # x_ref: (TILE_M, K_PAD)  im2col rows; col K_true is a ones-column (bias)
    # w_ref: (K_PAD, N_PAD)   folded weights; row K_true is the bias
    # o_ref: (TILE_M, N_PAD)  lane-dense output tile
    acc = jnp.dot(x_ref[...], w_ref[...], preferred_element_type=jnp.float32)
    o_ref[...] = jnp.maximum(acc, 0.0).astype(o_ref.dtype)


def conv_model_forward(x_nchw, weight, bias, *, tile_m=None):
    """x_nchw: (1, C_in, H, W), weight: (C_out, C_in, KH, KW), bias: (C_out,).

    Returns (H*W, C_out), matching PyTorch squeeze(0).permute(1,2,0).view(-1, C_out).

    tile_m: rows per grid step (multiple of 8). Default None = auto:
      * v5e/v6e: one grid step for small H*W; 512-2048-row tiles for large H*W
        (per-step overhead amortization; ~85% HBM roofline at 512-1024 vs ~29%
        at 128-row tiles).
      * v7x: an even number of balanced tiles so both TensorCores get work.
    """
    _, c_in, h, w = x_nchw.shape
    c_out, _, kh, kw = weight.shape
    p = kh // 2                               # "same" padding for k=5
    m = h * w
    k_true = kh * kw * c_in                   # 100 for 5x5x4

    # ---- glue (plain JAX, fuses into one concatenate/pad): lane-dense im2col ----
    x_hwc = jnp.transpose(x_nchw[0], (1, 2, 0))                  # (H, W, C_in)
    x_sp = jnp.pad(x_hwc, ((p, p), (p, p), (0, 0)))              # (H+2p, W+2p, C_in)
    cols = [
        x_sp[ih:ih + h, iw:iw + w, :].reshape(m, c_in)
        for ih in range(kh)
        for iw in range(kw)
    ]
    ones_col = jnp.ones((m, 1), x_nchw.dtype)                    # bias rides the MXU
    x_cols = jnp.concatenate(cols + [ones_col], axis=-1)         # (M, K_true+1)

    # folded weights, ordering matches (ih, iw, ci) layout of x_cols
    w2d = jnp.transpose(weight, (2, 3, 1, 0)).reshape(k_true, c_out)
    w_aug = jnp.concatenate([w2d, bias[None, :]], axis=0)        # (K_true+1, C_out)

    # ---- tiling & lane/sublane-dense padding ----
    if tile_m is None:
        tile_m, m_pad = _choose_tiling(m, _tensorcores_per_chip())
    else:
        tile_m = max(8, _round_up(min(tile_m, m), 8))
        m_pad = _round_up(m, tile_m)
    k_pad = _round_up(k_true + 1, 128)                           # 128
    n_pad = _round_up(c_out, 128)                                # 128 (keep lane-dense!)

    x_full = jnp.pad(x_cols, ((0, m_pad - m), (0, k_pad - (k_true + 1))))
    w_full = jnp.pad(w_aug, ((0, k_pad - (k_true + 1)), (0, n_pad - c_out)))

    grid = (m_pad // tile_m,)

    cost = pl.CostEstimate(
        flops=2 * m_pad * k_pad * n_pad,
        transcendentals=0,
        bytes_accessed=(m_pad * k_pad + k_pad * n_pad + m_pad * n_pad) * 4,
    )

    out_padded = pl.pallas_call(
        conv_relu_kernel,
        out_shape=jax.ShapeDtypeStruct((m_pad, n_pad), x_nchw.dtype),
        grid=grid,
        in_specs=[
            pl.BlockSpec((tile_m, k_pad), lambda i: (i, 0)),     # row tile
            pl.BlockSpec((k_pad, n_pad), lambda i: (0, 0)),      # weights resident
        ],
        out_specs=pl.BlockSpec((tile_m, n_pad), lambda i: (i, 0)),
        compiler_params=pltpu.CompilerParams(
            dimension_semantics=("parallel",)                    # independent row tiles
        ),
        cost_estimate=cost,
    )(x_full, w_full)

    return out_padded[:m, :c_out]


def reference_forward(x_nchw, weight, bias):
    out = jax.lax.conv_general_dilated(
        x_nchw, weight, window_strides=(1, 1), padding=((2, 2), (2, 2)),
        dimension_numbers=("NCHW", "OIHW", "NCHW"),
        precision=jax.lax.Precision.HIGHEST,
    ) + bias[None, :, None, None]
    out = jnp.maximum(out, 0.0)
    out = jnp.transpose(out[0], (1, 2, 0))          # (H, W, C_out)
    return out.reshape(-1, out.shape[-1])           # (H*W, C_out)


if __name__ == "__main__":
    key = jax.random.PRNGKey(0)
    k_x, k_w, k_b = jax.random.split(key, 3)

    in_channels, out_channels = 4, 8
    H = W = 16

    # deterministic synthetic parameters (shapes per nn.Conv2d(in, out, (5,5), padding=2))
    fan_in = in_channels * 5 * 5
    bound = 1.0 / (fan_in ** 0.5)
    weight = jax.random.uniform(
        k_w, (out_channels, in_channels, 5, 5), jnp.float32, -bound, bound
    )
    bias = jax.random.uniform(k_b, (out_channels,), jnp.float32, -bound, bound)

    x = jax.random.normal(k_x, (1, in_channels, H, W), jnp.float32)

    out = conv_model_forward(x, weight, bias)
    out = jax.block_until_ready(out)

    ref = reference_forward(x, weight, bias)
    assert out.shape == (H * W, out_channels)
    assert jnp.allclose(out, ref, atol=1e-5, rtol=1e-5)

    print("KERNEL_OK")
</pallas_src>

<mosaic_0001>
module attributes {stable_mosaic.version = 11 : i64} {
  func.func @conv_relu_kernel(%arg0: i32, %arg1: memref<256x128xf32, #tpu.memory_space<vmem>>, %arg2: memref<128x128xf32, #tpu.memory_space<vmem>>, %arg3: memref<256x128xf32, #tpu.memory_space<vmem>>) attributes {dimension_semantics = [#tpu.dimension_semantics<parallel>], iteration_bounds = array<i64: 1>, scalar_prefetch = 0 : i64, scratch_operands = 0 : i64, tpu.core_type = #tpu.core_type<tc>, window_params = [{transform_indices = @transform_0, window_bounds = array<i64: 256, 128>}, {pipeline_mode = #tpu.pipeline_mode<synchronous>, transform_indices = @transform_1, window_bounds = array<i64: 128, 128>}, {transform_indices = @transform_2, window_bounds = array<i64: 256, 128>}]} {
    %c0 = arith.constant 0 : index
    %c0_0 = arith.constant 0 : index
    %0 = vector.load %arg1[%c0, %c0_0] : memref<256x128xf32, #tpu.memory_space<vmem>>, vector<256x128xf32>
    %c0_1 = arith.constant 0 : index
    %c0_2 = arith.constant 0 : index
    %1 = vector.load %arg2[%c0_1, %c0_2] : memref<128x128xf32, #tpu.memory_space<vmem>>, vector<128x128xf32>
    %cst = arith.constant dense<0.000000e+00> : vector<256x128xf32>
    %2 = tpu.matmul %0, %1, %cst {dimension_numbers = #tpu.dot_dimension_numbers<[1], [0], [0], [1], [0, 0, 1, 1], [], []>} : vector<256x128xf32>, vector<128x128xf32>, vector<256x128xf32> -> vector<256x128xf32>
    %cst_3 = arith.constant 0.000000e+00 : f32
    %3 = vector.broadcast %cst_3 : f32 to vector<256x128xf32>
    %4 = arith.maximumf %2, %3 : vector<256x128xf32>
    %c0_4 = arith.constant 0 : index
    %c0_5 = arith.constant 0 : index
    %5 = vector.load %arg3[%c0_4, %c0_5] : memref<256x128xf32, #tpu.memory_space<vmem>>, vector<256x128xf32>
    tpu.vector_store %arg3[%c0_4, %c0_5], %4 {strides = array<i32>} : memref<256x128xf32, #tpu.memory_space<vmem>>, vector<256x128xf32>,
    return
  }
  func.func @transform_0(%arg0: i32) -> (i32, i32) {
    %c0_i32 = arith.constant 0 : i32
    %c0_i32_0 = arith.constant 0 : i32
    return %arg0, %c0_i32 : i32, i32
  }
  func.func @transform_1(%arg0: i32) -> (i32, i32) {
    %c0_i32 = arith.constant 0 : i32
    %c0_i32_0 = arith.constant 0 : i32
    %c0_i32_1 = arith.constant 0 : i32
    return %c0_i32, %c0_i32_0 : i32, i32
  }
  func.func @transform_2(%arg0: i32) -> (i32, i32) {
    %c0_i32 = arith.constant 0 : i32
    %c0_i32_0 = arith.constant 0 : i32
    return %arg0, %c0_i32 : i32, i32
  }
}

</mosaic_0001>

<bundles_post_ra>
// kernel: tpu_custom_call.1
= control target key start
LH: loop header
LB: loop body
LE: loop exit
PB: predicated region body
PF: predicated region fallthrough
CT: control target
= control target key end

     0   :  { %7 = vsyncpa [#allocation3], 0  ;;  %s713_s0 = inlined_call_operand.hbm [shape: f32[256,128], index: 0, kind: input, shape index: {}]   ;;  %s714_s1 = inlined_call_operand.hbm [shape: f32[128,128], index: 1, kind: input, shape index: {}]   ;;  %s715_s2 = inlined_call_operand.hbm [shape: f32[256,128], index: 2, kind: output, shape index: {}]  }
   0x1   :  { %8 = vsyncpa [#allocation6], 0 }
   0x2   :  { %9 = vsyncpa [#allocation4], 0  ;;  %s648_s9 = smov [#allocation2]   ;;  %s576_s13 = scalar_lea.hbm %s713_s0, 4096 }
   0x3   :  { %s15_s10 = sshll.u32 %s648_s9, 4  ;;  %p577_p0 = scmp.ne.s32.totalorder %s713_s0, %s576_s13  ;;  %s16_s10 = int_to_ptr.vmem [resolvable:$true] %s15_s10 }
   0x4   :  { %p580_p1 = scmp.lt.u32.totalorder %s576_s13, %s713_s0 }
   0x6   :  { %p582_p2 = pnand %p580_p1, %p577_p0 }
   0x8   :  { %585 = shalt.err (!%p582_p2)
}
   0x9   :  { %s586_s18 = scalar_lea.vmem %s16_s10, 4096  ;;  %p591_p4 = scmp.lt.s32.totalorder %s16_s10, %s16_s10 }
   0xa   :  { %p587_p3 = scmp.ne.s32.totalorder %s16_s10, %s586_s18  ;;  %p592_p5 = scmp.lt.s32.totalorder %s586_s18, %s586_s18 }
   0xc   :  { %p593_p6 = por %p592_p5, %p591_p4 }
   0xe   :  { %p594_p7 = pnand %p593_p6, %p587_p3 }
  0x10   :  { %597 = shalt.err (!%p594_p7)
}
  0x11   :  { %s649_s19 = smov 128   ;;  %s650_s20 = smov 8  }
  0x12   :  { %21 = dma.hbm_to_vmem [thread:$0]  %s713_s0, 4096, %s16_s10, [#allocation3], %s649_s19, %s649_s19, %s650_s20  }
  0x13   :  { %s651_s23 = smov [#allocation5]   ;;  %s598_s27 = scalar_lea.hbm %s714_s1, 2048 }
  0x14   :  { %s27_s24 = sshll.u32 %s651_s23, 4  ;;  %p599_p8 = scmp.ne.s32.totalorder %s714_s1, %s598_s27  ;;  %s28_s24 = int_to_ptr.vmem [resolvable:$true] %s27_s24 }
  0x15   :  { %p602_p9 = scmp.lt.u32.totalorder %s598_s27, %s714_s1 }
  0x17   :  { %p604_p10 = pnand %p602_p9, %p599_p8 }
  0x19   :  { %607 = shalt.err (!%p604_p10)
}
  0x1a   :  { %s608_s4 = scalar_lea.vmem %s28_s24, 2048  ;;  %p613_p12 = scmp.lt.s32.totalorder %s28_s24, %s28_s24 }
  0x1b   :  { %p609_p11 = scmp.ne.s32.totalorder %s28_s24, %s608_s4  ;;  %p614_p13 = scmp.lt.s32.totalorder %s608_s4, %s608_s4 }
  0x1d   :  { %p615_p0 = por %p614_p13, %p613_p12 }
  0x1f   :  { %p616_p1 = pnand %p615_p0, %p609_p11 }
  0x21   :  { %619 = shalt.err (!%p616_p1)
}
  0x22   :  { %33 = dma.hbm_to_vmem [thread:$0]  %s714_s1, 2048, %s28_s24, [#allocation6], %s649_s19, %s649_s19, %s650_s20  }
  0x23   :  { %642 = dma.done.wait [#allocation3], 4096  }
  0x24   :  { %643 = vsyncadd [#allocation3], 4294963200 }
  0x25   :  { %644 = dma.done.wait [#allocation6], 2048  }
  0x26   :  { %645 = vsyncadd [#allocation6], 4294965248  ;;  %v72_v0 = vld [vmem:[#allocation5] sm:$0xff]  ;;  %v73_v1 = vld [vmem:[#allocation5 + $0x8] sm:$0xff]  ;;  %s652_s1 = smov [#allocation7]  }
  0x27   :  { %v74_v2 = vld [vmem:[#allocation5 + $0x10] sm:$0xff]  ;;  %v523_v3 = vpack.c.bf16 %v73_v1, %v72_v0  ;;  %v75_v4 = vld [vmem:[#allocation5 + $0x18] sm:$0xff]  ;;  %v76_v6 = vld [vmem:[#allocation5 + $0x20] sm:$0xff]  ;;  %s382_s6 = sshll.u32 %s652_s1, 4  ;;  %s383_s6 = int_to_ptr.vmem [resolvable:$true] %s382_s6 }
  0x28   :  { %v527_v5 = vpack.c.bf16 %v75_v4, %v74_v2  ;;  %v77_v7 = vld [vmem:[#allocation5 + $0x28] sm:$0xff]  ;;  %v40_v9 = vld [vmem:[#allocation2] sm:$0xff]  ;;  %v78_v11 = vld [vmem:[#allocation5 + $0x30] sm:$0xff]  ;;  %s620_s7 = scalar_lea.vmem %s383_s6, 4096  ;;  %p625_p3 = scmp.lt.s32.totalorder %s383_s6, %s383_s6 }
  0x29   :  { %524 = vmatprep.subr.bf16.mxu0 %v523_v3  ;;  %555 = vmatprep.subr.bf16.mxu1 %v523_v3  ;;  %v531_v8 = vpack.c.bf16 %v77_v7, %v76_v6  ;;  %v56_v10 = vld [vmem:[#allocation2 + $0x80] sm:$0xff]  ;;  %v79_v12 = vld [vmem:[#allocation5 + $0x38] sm:$0xff]  ;;  %v81_v15 = vld [vmem:[#allocation5 + $0x48] sm:$0xff]  ;;  %p621_p2 = scmp.ne.s32.totalorder %s383_s6, %s620_s7  ;;  %p626_p4 = scmp.lt.s32.totalorder %s620_s7, %s620_s7 }
  0x2a   :  { %526 = vmatpush3.bf16.msra.mxu0 %v523_v3  ;;  %563 = vmatpush3.bf16.msra.mxu1 %v523_v3  ;;  %v535_v13 = vpack.c.bf16 %v79_v12, %v78_v11  ;;  %v80_v14 = vld [vmem:[#allocation5 + $0x40] sm:$0xff]  ;;  %v82_v17 = vld [vmem:[#allocation5 + $0x50] sm:$0xff]  ;;  %v83_v18 = vld [vmem:[#allocation5 + $0x58] sm:$0xff] }
  0x2b   :  { %528 = vmatprep.subr.bf16.mxu0 %v527_v5  ;;  %556 = vmatprep.subr.bf16.mxu1 %v527_v5  ;;  %v539_v16 = vpack.c.bf16 %v81_v15, %v80_v14  ;;  %v543_v19 = vpack.c.bf16 %v83_v18, %v82_v17  ;;  %v84_v20 = vld [vmem:[#allocation5 + $0x60] sm:$0xff]  ;;  %v85_v21 = vld [vmem:[#allocation5 + $0x68] sm:$0xff]  ;;  %v86_v23 = vld [vmem:[#allocation5 + $0x70] sm:$0xff]  ;;  %p627_p5 = por %p626_p4, %p625_p3 }
  0x2c   :  { %475 = vmatprep.mubr.f32.mxu0 %v40_v9  ;;  %499 = vmatprep.mubr.f32.mxu1 %v56_v10  ;;  %v547_v22 = vpack.c.bf16 %v85_v21, %v84_v20  ;;  %v87_v24 = vld [vmem:[#allocation5 + $0x78] sm:$0xff]  ;;  %v41_v26 = vld [vmem:[#allocation2 + $0x8] sm:$0xff]  ;;  %v42_v28 = vld [vmem:[#allocation2 + $0x10] sm:$0xff] }
  0x2d   :  { %v551_v25 = vpack.c.bf16 %v87_v24, %v86_v23  ;;  %v57_v27 = vld [vmem:[#allocation2 + $0x88] sm:$0xff]  ;;  %v58_v29 = vld [vmem:[#allocation2 + $0x90] sm:$0xff]  ;;  %v43_v30 = vld [vmem:[#allocation2 + $0x18] sm:$0xff]  ;;  %p628_p6 = pnand %p627_p5, %p621_p2 }
  0x2e   :  { %530 = vmatpush3.bf16.msra.mxu0 %v527_v5  ;;  %564 = vmatpush3.bf16.msra.mxu1 %v527_v5  ;;  %v59_v31 = vld [vmem:[#allocation2 + $0x98] sm:$0xff]  ;;  %v44_v32 = vld [vmem:[#allocation2 + $0x20] sm:$0xff]  ;;  %v45_v34 = vld [vmem:[#allocation2 + $0x28] sm:$0xff] }
  0x2f   :  { %532 = vmatprep.subr.bf16.mxu0 %v531_v8  ;;  %557 = vmatprep.subr.bf16.mxu1 %v531_v8  ;;  %v60_v33 = vld [vmem:[#allocation2 + $0xa0] sm:$0xff]  ;;  %v61_v35 = vld [vmem:[#allocation2 + $0xa8] sm:$0xff]  ;;  %v46_v36 = vld [vmem:[#allocation2 + $0x30] sm:$0xff] }
  0x30   :  { %v62_v37 = vld [vmem:[#allocation2 + $0xb0] sm:$0xff]  ;;  %v47_v38 = vld [vmem:[#allocation2 + $0x38] sm:$0xff]  ;;  %v48_v40 = vld [vmem:[#allocation2 + $0x40] sm:$0xff] }
  0x31   :  { %v63_v39 = vld [vmem:[#allocation2 + $0xb8] sm:$0xff]  ;;  %v64_v41 = vld [vmem:[#allocation2 + $0xc0] sm:$0xff]  ;;  %v49_v42 = vld [vmem:[#allocation2 + $0x48] sm:$0xff] }
  0x32   :  { %534 = vmatpush3.bf16.msra.mxu0 %v531_v8  ;;  %565 = vmatpush3.bf16.msra.mxu1 %v531_v8  ;;  %v65_v43 = vld [vmem:[#allocation2 + $0xc8] sm:$0xff]  ;;  %v50_v44 = vld [vmem:[#allocation2 + $0x50] sm:$0xff]  ;;  %v51_v46 = vld [vmem:[#allocation2 + $0x58] sm:$0xff] }
  0x33   :  { %536 = vmatprep.subr.bf16.mxu0 %v535_v13  ;;  %558 = vmatprep.subr.bf16.mxu1 %v535_v13  ;;  %v66_v45 = vld [vmem:[#allocation2 + $0xd0] sm:$0xff]  ;;  %v67_v47 = vld [vmem:[#allocation2 + $0xd8] sm:$0xff]  ;;  %v52_v48 = vld [vmem:[#allocation2 + $0x60] sm:$0xff] }
  0x34   :  { %v68_v49 = vld [vmem:[#allocation2 + $0xe0] sm:$0xff]  ;;  %v53_v50 = vld [vmem:[#allocation2 + $0x68] sm:$0xff]  ;;  %v54_v52 = vld [vmem:[#allocation2 + $0x70] sm:$0xff] }
  0x35   :  { %v69_v51 = vld [vmem:[#allocation2 + $0xe8] sm:$0xff]  ;;  %v70_v53 = vld [vmem:[#allocation2 + $0xf0] sm:$0xff]  ;;  %v55_v54 = vld [vmem:[#allocation2 + $0x78] sm:$0xff] }
  0x36   :  { %538 = vmatpush3.bf16.msra.mxu0 %v535_v13  ;;  %566 = vmatpush3.bf16.msra.mxu1 %v535_v13  ;;  %v71_v55 = vld [vmem:[#allocation2 + $0xf8] sm:$0xff] }
  0x37   :  { %540 = vmatprep.subr.bf16.mxu0 %v539_v16  ;;  %559 = vmatprep.subr.bf16.mxu1 %v539_v16 }
  0x3a   :  { %542 = vmatpush3.bf16.msra.mxu0 %v539_v16  ;;  %567 = vmatpush3.bf16.msra.mxu1 %v539_v16 }
  0x3b   :  { %544 = vmatprep.subr.bf16.mxu0 %v543_v19  ;;  %560 = vmatprep.subr.bf16.mxu1 %v543_v19 }
  0x3e   :  { %546 = vmatpush3.bf16.msra.mxu0 %v543_v19  ;;  %568 = vmatpush3.bf16.msra.mxu1 %v543_v19 }
  0x3f   :  { %548 = vmatprep.subr.bf16.mxu0 %v547_v22  ;;  %561 = vmatprep.subr.bf16.mxu1 %v547_v22 }
  0x42   :  { %550 = vmatpush3.bf16.msra.mxu0 %v547_v22  ;;  %569 = vmatpush3.bf16.msra.mxu1 %v547_v22 }
  0x43   :  { %552 = vmatprep.subr.bf16.mxu0 %v551_v25  ;;  %562 = vmatprep.subr.bf16.mxu1 %v551_v25 }
  0x46   :  { %554 = vmatpush3.bf16.msra.mxu0 %v551_v25  ;;  %570 = vmatpush3.bf16.msra.mxu1 %v551_v25 }
  0x49   :  { %476 = vmatmul.mubr.f32.vlgmr.msra.gmra.mrb[0].mxu0 %v41_v26  ;;  %500 = vmatmul.mubr.f32.vlgmr.msra.gmra.mrb[0].mxu1 %v57_v27 }
  0x4a   :  { %478 = vmatprep.mubr.f32.mxu0 %v42_v28  ;;  %502 = vmatprep.mubr.f32.mxu1 %v58_v29 }
  0x4d   :  { %479 = vmatmul.mubr.f32.gmra.mrb[2].mxu0 %v43_v30  ;;  %503 = vmatmul.mubr.f32.gmra.mrb[2].mxu1 %v59_v31 }
  0x4e   :  { %481 = vmatprep.mubr.f32.mxu0 %v44_v32  ;;  %505 = vmatprep.mubr.f32.mxu1 %v60_v33 }
  0x51   :  { %482 = vmatmul.mubr.f32.gmra.mrb[4].mxu0 %v45_v34  ;;  %506 = vmatmul.mubr.f32.gmra.mrb[4].mxu1 %v61_v35 }
  0x52   :  { %484 = vmatprep.mubr.f32.mxu0 %v46_v36  ;;  %508 = vmatprep.mubr.f32.mxu1 %v62_v37 }
  0x55   :  { %485 = vmatmul.mubr.f32.gmra.mrb[6].mxu0 %v47_v38  ;;  %509 = vmatmul.mubr.f32.gmra.mrb[6].mxu1 %v63_v39 }
  0x56   :  { %487 = vmatprep.mubr.f32.mxu0 %v48_v40  ;;  %511 = vmatprep.mubr.f32.mxu1 %v64_v41 }
  0x59   :  { %488 = vmatmul.mubr.f32.gmra.mrb[8].mxu0 %v49_v42  ;;  %512 = vmatmul.mubr.f32.gmra.mrb[8].mxu1 %v65_v43 }
  0x5a   :  { %490 = vmatprep.mubr.f32.mxu0 %v50_v44  ;;  %514 = vmatprep.mubr.f32.mxu1 %v66_v45 }
  0x5d   :  { %491 = vmatmul.mubr.f32.gmra.mrb[10].mxu0 %v51_v46  ;;  %515 = vmatmul.mubr.f32.gmra.mrb[10].mxu1 %v67_v47 }
  0x5e   :  { %493 = vmatprep.mubr.f32.mxu0 %v52_v48  ;;  %517 = vmatprep.mubr.f32.mxu1 %v68_v49 }
  0x61   :  { %494 = vmatmul.mubr.f32.gmra.mrb[12].mxu0 %v53_v50  ;;  %518 = vmatmul.mubr.f32.gmra.mrb[12].mxu1 %v69_v51 }
  0x62   :  { %496 = vmatprep.mubr.f32.mxu0 %v54_v52  ;;  %520 = vmatprep.mubr.f32.mxu1 %v70_v53 }
  0x65   :  { %497 = vmatmul.mubr.f32.gmra.mrb[14].mxu0 %v55_v54  ;;  %521 = vmatmul.mubr.f32.gmra.mrb[14].mxu1 %v71_v55 }
 0x11c   :  { %v477_v56 = vpop.f32.mrb[0].mxu0  ;;  %v501_v57 = vpop.f32.mrb[0].mxu1 }
 0x11d   :  { %v314_v58 = vmax.f32 %v477_v56, 0.0  ;;  %v330_v59 = vmax.f32 %v501_v57, 0.0  ;;  %v154_v60 = vpop.f32.mrb[1].mxu0  ;;  %v234_v61 = vpop.f32.mrb[1].mxu1 }
 0x11e   :  { %v313_v62 = vmax.f32 %v154_v60, 0.0  ;;  %v329_v63 = vmax.f32 %v234_v61, 0.0 }
 0x11f   :  { %346 = vst [vmem:[#allocation7 + $0x8] sm:$0xff] %v314_v58  ;;  %362 = vst [vmem:[#allocation7 + $0x88] sm:$0xff] %v330_v59 }
 0x120   :  { %345 = vst [vmem:[#allocation7] sm:$0xff] %v313_v62  ;;  %361 = vst [vmem:[#allocation7 + $0x80] sm:$0xff] %v329_v63  ;;  %v480_v0 = vpop.f32.mrb[2].mxu0  ;;  %v504_v1 = vpop.f32.mrb[2].mxu1 }
 0x121   :  { %v316_v2 = vmax.f32 %v480_v0, 0.0  ;;  %v332_v3 = vmax.f32 %v504_v1, 0.0  ;;  %v164_v4 = vpop.f32.mrb[3].mxu0  ;;  %v244_v5 = vpop.f32.mrb[3].mxu1 }
 0x122   :  { %v315_v6 = vmax.f32 %v164_v4, 0.0  ;;  %v331_v7 = vmax.f32 %v244_v5, 0.0 }
 0x123   :  { %348 = vst [vmem:[#allocation7 + $0x18] sm:$0xff] %v316_v2  ;;  %364 = vst [vmem:[#allocation7 + $0x98] sm:$0xff] %v332_v3 }
 0x124   :  { %347 = vst [vmem:[#allocation7 + $0x10] sm:$0xff] %v315_v6  ;;  %363 = vst [vmem:[#allocation7 + $0x90] sm:$0xff] %v331_v7  ;;  %v483_v8 = vpop.f32.mrb[4].mxu0  ;;  %v507_v9 = vpop.f32.mrb[4].mxu1 }
 0x125   :  { %v318_v10 = vmax.f32 %v483_v8, 0.0  ;;  %v334_v11 = vmax.f32 %v507_v9, 0.0  ;;  %v174_v12 = vpop.f32.mrb[5].mxu0  ;;  %v254_v13 = vpop.f32.mrb[5].mxu1 }
 0x126   :  { %v317_v14 = vmax.f32 %v174_v12, 0.0  ;;  %v333_v15 = vmax.f32 %v254_v13, 0.0 }
 0x127   :  { %350 = vst [vmem:[#allocation7 + $0x28] sm:$0xff] %v318_v10  ;;  %366 = vst [vmem:[#allocation7 + $0xa8] sm:$0xff] %v334_v11 }
 0x128   :  { %349 = vst [vmem:[#allocation7 + $0x20] sm:$0xff] %v317_v14  ;;  %365 = vst [vmem:[#allocation7 + $0xa0] sm:$0xff] %v333_v15  ;;  %v486_v16 = vpop.f32.mrb[6].mxu0  ;;  %v510_v17 = vpop.f32.mrb[6].mxu1 }
 0x129   :  { %v320_v18 = vmax.f32 %v486_v16, 0.0  ;;  %v336_v19 = vmax.f32 %v510_v17, 0.0  ;;  %v184_v20 = vpop.f32.mrb[7].mxu0  ;;  %v264_v21 = vpop.f32.mrb[7].mxu1 }
 0x12a   :  { %v319_v22 = vmax.f32 %v184_v20, 0.0  ;;  %v335_v23 = vmax.f32 %v264_v21, 0.0 }
 0x12b   :  { %352 = vst [vmem:[#allocation7 + $0x38] sm:$0xff] %v320_v18  ;;  %368 = vst [vmem:[#allocation7 + $0xb8] sm:$0xff] %v336_v19 }
 0x12c   :  { %351 = vst [vmem:[#allocation7 + $0x30] sm:$0xff] %v319_v22  ;;  %367 = vst [vmem:[#allocation7 + $0xb0] sm:$0xff] %v335_v23  ;;  %v489_v24 = vpop.f32.mrb[8].mxu0  ;;  %v513_v25 = vpop.f32.mrb[8].mxu1 }
 0x12d   :  { %v322_v26 = vmax.f32 %v489_v24, 0.0  ;;  %v338_v27 = vmax.f32 %v513_v25, 0.0  ;;  %v194_v28 = vpop.f32.mrb[9].mxu0  ;;  %v274_v29 = vpop.f32.mrb[9].mxu1 }
 0x12e   :  { %v321_v30 = vmax.f32 %v194_v28, 0.0  ;;  %v337_v31 = vmax.f32 %v274_v29, 0.0 }
 0x12f   :  { %354 = vst [vmem:[#allocation7 + $0x48] sm:$0xff] %v322_v26  ;;  %370 = vst [vmem:[#allocation7 + $0xc8] sm:$0xff] %v338_v27 }
 0x130   :  { %353 = vst [vmem:[#allocation7 + $0x40] sm:$0xff] %v321_v30  ;;  %369 = vst [vmem:[#allocation7 + $0xc0] sm:$0xff] %v337_v31  ;;  %v492_v32 = vpop.f32.mrb[10].mxu0  ;;  %v516_v33 = vpop.f32.mrb[10].mxu1 }
 0x131   :  { %v324_v34 = vmax.f32 %v492_v32, 0.0  ;;  %v340_v35 = vmax.f32 %v516_v33, 0.0  ;;  %v204_v36 = vpop.f32.mrb[11].mxu0  ;;  %v284_v37 = vpop.f32.mrb[11].mxu1 }
 0x132   :  { %v323_v38 = vmax.f32 %v204_v36, 0.0  ;;  %v339_v39 = vmax.f32 %v284_v37, 0.0 }
 0x133   :  { %356 = vst [vmem:[#allocation7 + $0x58] sm:$0xff] %v324_v34  ;;  %372 = vst [vmem:[#allocation7 + $0xd8] sm:$0xff] %v340_v35 }
 0x134   :  { %355 = vst [vmem:[#allocation7 + $0x50] sm:$0xff] %v323_v38  ;;  %371 = vst [vmem:[#allocation7 + $0xd0] sm:$0xff] %v339_v39  ;;  %v495_v40 = vpop.f32.mrb[12].mxu0  ;;  %v519_v41 = vpop.f32.mrb[12].mxu1 }
 0x135   :  { %v326_v42 = vmax.f32 %v495_v40, 0.0  ;;  %v342_v43 = vmax.f32 %v519_v41, 0.0  ;;  %v214_v44 = vpop.f32.mrb[13].mxu0  ;;  %v294_v45 = vpop.f32.mrb[13].mxu1 }
 0x136   :  { %v325_v46 = vmax.f32 %v214_v44, 0.0  ;;  %v341_v47 = vmax.f32 %v294_v45, 0.0 }
 0x137   :  { %358 = vst [vmem:[#allocation7 + $0x68] sm:$0xff] %v326_v42  ;;  %374 = vst [vmem:[#allocation7 + $0xe8] sm:$0xff] %v342_v43 }
 0x138   :  { %357 = vst [vmem:[#allocation7 + $0x60] sm:$0xff] %v325_v46  ;;  %373 = vst [vmem:[#allocation7 + $0xe0] sm:$0xff] %v341_v47  ;;  %v498_v48 = vpop.f32.mrb[14].mxu0  ;;  %v522_v49 = vpop.f32.mrb[14].mxu1 }
 0x139   :  { %v328_v50 = vmax.f32 %v498_v48, 0.0  ;;  %v344_v51 = vmax.f32 %v522_v49, 0.0  ;;  %v224_v52 = vpop.f32.mrb[15].mxu0  ;;  %v304_v53 = vpop.f32.mrb[15].mxu1 }
 0x13a   :  { %v327_v54 = vmax.f32 %v224_v52, 0.0  ;;  %v343_v55 = vmax.f32 %v304_v53, 0.0 }
 0x13b   :  { %360 = vst [vmem:[#allocation7 + $0x78] sm:$0xff] %v328_v50  ;;  %376 = vst [vmem:[#allocation7 + $0xf8] sm:$0xff] %v344_v51 }
 0x13c   :  { %359 = vst [vmem:[#allocation7 + $0x70] sm:$0xff] %v327_v54  ;;  %375 = vst [vmem:[#allocation7 + $0xf0] sm:$0xff] %v343_v55 }
 0x13d   :  { %631 = shalt.err (!%p628_p6)
}
 0x13e   :  { %s632_s10 = scalar_lea.hbm %s715_s2, 4096 }
 0x13f   :  { %p633_p7 = scmp.ne.s32.totalorder %s715_s2, %s632_s10  ;;  %p636_p8 = scmp.lt.u32.totalorder %s632_s10, %s715_s2 }
 0x141   :  { %p638_p9 = pnand %p636_p8, %p633_p7 }
 0x143   :  { %641 = shalt.err (!%p638_p9)
}
 0x144   :  { %388 = dma.vmem_to_hbm [thread:$0]  %s383_s6, 4096, %s715_s2, [#allocation4], %s649_s19, %s649_s19, %s650_s20  }
 0x145   :  { %646 = dma.done.wait [#allocation4], 4096  }
 0x146   :  { %647 = vsyncadd [#allocation4], 4294963200 }
 0x147   :  { %392 = vsyncpa [#allocation3], 1 }
 0x148   :  { %393 = vsyncpa [#allocation6], 1 }
 0x149   :  { %394 = vsyncpa [#allocation4], 1 }

</bundles_post_ra>
